<compile_context>
chip_gen: v7x
topology: tpu7x:2x2x1
jax: 0.10.0
libtpu: 0.0.40
codegen_flags: <defaults>
</compile_context>

<pallas_src>
import functools

import jax
import jax.numpy as jnp
from jax.experimental import pallas as pl
from jax.experimental.pallas import tpu as pltpu

_LANE = 128


def _seq_loss_kernel(*refs, weights, inv_denom):
    """refs = (gt_ref, mask_ref, pred_ref_0..pred_ref_{n-1}, out_ref).

    Each input ref is a lane-dense (tile_rows, 128) block; out_ref is a (1,1)
    SMEM block holding this tile's partial of the final loss.
    """
    gt_ref, mask_ref = refs[0], refs[1]
    pred_refs = refs[2:-1]
    out_ref = refs[-1]

    gt = gt_ref[...].astype(jnp.float32)                      # (TR, 128)

    # acc = sum_i w_i * |pred_i - gt|   (mask factored out, applied once)
    acc = jnp.float32(weights[0]) * jnp.abs(
        pred_refs[0][...].astype(jnp.float32) - gt)
    for w, p_ref in zip(weights[1:], pred_refs[1:]):
        acc = acc + jnp.float32(w) * jnp.abs(p_ref[...].astype(jnp.float32) - gt)

    masked = mask_ref[...].astype(jnp.float32) * acc          # (TR, 128)
    # One cross-lane reduce per tile (amortized over all N predictions).
    out_ref[0, 0] = jnp.sum(masked) * jnp.float32(inv_denom)


def _round_up(x, m):
    return ((x + m - 1) // m) * m


def _to_lane_dense(x, rows_padded):
    """Flatten x and reshape to (rows_padded, 128), zero-padding the tail."""
    flat = x.reshape(-1)
    pad = rows_padded * _LANE - flat.shape[0]
    if pad:
        flat = jnp.pad(flat, (0, pad))
    return flat.reshape(rows_padded, _LANE)


def sequence_loss(flow_preds, flows, valids, *, gamma, max_flow):
    """Pallas implementation of SequenceLoss.forward.

    flow_preds: list of N arrays [B, 2, H, W]
    flows:      [B, num_flows, 2, H, W]
    valids:     [B, num_flows, 1, H, W]
    """
    flow_gt = flows[:, 0]                     # [B, 2, H, W]
    valid = valids[:, 0]                      # [B, 1, H, W]
    n = len(flow_preds)
    B, C, H, W = flow_gt.shape
    total = B * C * H * W                     # denom of torch .mean()

    # --- mask: computed once (grid/prediction invariant), broadcast over C ---
    gt_f32 = flow_gt.astype(jnp.float32)
    mag = jnp.sqrt(jnp.sum(gt_f32 * gt_f32, axis=1, keepdims=True))   # [B,1,H,W]
    mask = jnp.logical_and(valid >= 0.5, mag < max_flow).astype(jnp.float32)
    mask = jnp.broadcast_to(mask, flow_gt.shape)                      # [B,2,H,W]

    # --- lane-dense tiling: (rows, 128), rows a multiple of 8 ------------------
    rows = -(-total // _LANE)
    # Keep double-buffered (N + 2) blocks within a ~16 MiB VMEM budget.
    per_row_bytes = (n + 2) * 2 * _LANE * 4
    cap_rows = max(8, ((16 * 1024 * 1024) // per_row_bytes) // 8 * 8)
    tile_rows_target = min(1024, cap_rows)
    if rows <= tile_rows_target:
        tile_rows = _round_up(rows, 8)
        rows_padded = tile_rows
    else:
        tile_rows = tile_rows_target
        rows_padded = _round_up(rows, tile_rows)
    num_tiles = rows_padded // tile_rows

    gt2 = _to_lane_dense(flow_gt, rows_padded)
    mask2 = _to_lane_dense(mask, rows_padded)          # zero pad -> pads contribute 0
    preds2 = [_to_lane_dense(p, rows_padded) for p in flow_preds]

    weights = tuple(float(gamma) ** (n - i - 1) for i in range(n))
    kernel = functools.partial(_seq_loss_kernel, weights=weights,
                               inv_denom=1.0 / float(total))

    blk = pl.BlockSpec((tile_rows, _LANE), lambda i: (i, 0))

    partials = pl.pallas_call(
        kernel,
        out_shape=jax.ShapeDtypeStruct((num_tiles, 1), jnp.float32),
        grid_spec=pltpu.PrefetchScalarGridSpec(
            num_scalar_prefetch=0,
            grid=(num_tiles,),
            in_specs=[blk, blk] + [blk] * n,
            out_specs=pl.BlockSpec((1, 1), lambda i: (i, 0),
                                   memory_space=pltpu.SMEM),
        ),
        compiler_params=pltpu.CompilerParams(
            dimension_semantics=("parallel",)),        # tiles are independent
    )(gt2, mask2, *preds2)

    return jnp.sum(partials)


def sequence_loss_ref(flow_preds, flows, valids, *, gamma, max_flow):
    """Pure-JAX reference mirroring the PyTorch code exactly."""
    flow_gt = flows[:, 0]
    valid = valids[:, 0]
    n = len(flow_preds)
    mag = jnp.sqrt(jnp.sum(flow_gt ** 2, axis=1, keepdims=True))
    valid = jnp.logical_and(valid >= 0.5, mag < max_flow)
    loss = jnp.float32(0.0)
    for i in range(n):
        w = gamma ** (n - i - 1)
        i_loss = jnp.abs(flow_preds[i] - flow_gt)
        loss += w * jnp.mean(valid * i_loss)
    return loss


if __name__ == "__main__":
    # SequenceLoss(gamma=0.8, max_flow=100.0) — deterministic synthetic data.
    gamma = 0.8
    max_flow = 100.0

    B, C, H, W = 2, 2, 16, 16     # flow has 2 channels (u, v)
    N_PRED = 8                    # RAFT-style sequence of refinement outputs

    key = jax.random.PRNGKey(0)
    k_pred, k_gt, k_val = jax.random.split(key, 3)

    flow_preds = [
        jax.random.normal(jax.random.fold_in(k_pred, i), (B, C, H, W),
                          dtype=jnp.float32) * 30.0
        for i in range(N_PRED)
    ]
    # flows: [B, num_flows, 2, H, W]; scaled so some pixels exceed max_flow
    flows = jax.random.normal(k_gt, (B, 1, C, H, W), dtype=jnp.float32) * 60.0
    # valids: [B, num_flows, 1, H, W] in [0, 1] so the >=0.5 threshold matters
    valids = jax.random.uniform(k_val, (B, 1, 1, H, W), dtype=jnp.float32)

    loss = sequence_loss(flow_preds, flows, valids,
                         gamma=gamma, max_flow=max_flow)
    loss = jax.block_until_ready(loss)

    loss_ref = sequence_loss_ref(flow_preds, flows, valids,
                                 gamma=gamma, max_flow=max_flow)
    loss_ref = jax.block_until_ready(loss_ref)

    assert jnp.allclose(loss, loss_ref, rtol=1e-4, atol=1e-5), (loss, loss_ref)
    print("KERNEL_OK")
</pallas_src>

<mosaic_0001>
module attributes {stable_mosaic.version = 11 : i64} {
  func.func @_seq_loss_kernel(%arg0: i32, %arg1: memref<8x128xf32, #tpu.memory_space<vmem>>, %arg2: memref<8x128xf32, #tpu.memory_space<vmem>>, %arg3: memref<8x128xf32, #tpu.memory_space<vmem>>, %arg4: memref<8x128xf32, #tpu.memory_space<vmem>>, %arg5: memref<8x128xf32, #tpu.memory_space<vmem>>, %arg6: memref<8x128xf32, #tpu.memory_space<vmem>>, %arg7: memref<8x128xf32, #tpu.memory_space<vmem>>, %arg8: memref<8x128xf32, #tpu.memory_space<vmem>>, %arg9: memref<8x128xf32, #tpu.memory_space<vmem>>, %arg10: memref<8x128xf32, #tpu.memory_space<vmem>>, %arg11: memref<1x1xf32, #tpu.memory_space<smem>>) attributes {dimension_semantics = [#tpu.dimension_semantics<parallel>], iteration_bounds = array<i64: 1>, scalar_prefetch = 0 : i64, scratch_operands = 0 : i64, tpu.core_type = #tpu.core_type<tc>, window_params = [{transform_indices = @transform_0, window_bounds = array<i64: 8, 128>}, {transform_indices = @transform_1, window_bounds = array<i64: 8, 128>}, {transform_indices = @transform_2, window_bounds = array<i64: 8, 128>}, {transform_indices = @transform_3, window_bounds = array<i64: 8, 128>}, {transform_indices = @transform_4, window_bounds = array<i64: 8, 128>}, {transform_indices = @transform_5, window_bounds = array<i64: 8, 128>}, {transform_indices = @transform_6, window_bounds = array<i64: 8, 128>}, {transform_indices = @transform_7, window_bounds = array<i64: 8, 128>}, {transform_indices = @transform_8, window_bounds = array<i64: 8, 128>}, {transform_indices = @transform_9, window_bounds = array<i64: 8, 128>}, {transform_indices = @transform_10, window_bounds = array<i64: 1, 1>}]} {
    %c0 = arith.constant 0 : index
    %c0_0 = arith.constant 0 : index
    %0 = vector.load %arg1[%c0, %c0_0] : memref<8x128xf32, #tpu.memory_space<vmem>>, vector<8x128xf32>
    %c0_1 = arith.constant 0 : index
    %c0_2 = arith.constant 0 : index
    %1 = vector.load %arg3[%c0_1, %c0_2] : memref<8x128xf32, #tpu.memory_space<vmem>>, vector<8x128xf32>
    %2 = arith.subf %1, %0 : vector<8x128xf32>
    %3 = math.absf %2 : vector<8x128xf32>
    %cst = arith.constant 0.209715202 : f32
    %4 = vector.broadcast %cst : f32 to vector<8x128xf32>
    %5 = arith.mulf %4, %3 : vector<8x128xf32>
    %c0_3 = arith.constant 0 : index
    %c0_4 = arith.constant 0 : index
    %6 = vector.load %arg4[%c0_3, %c0_4] : memref<8x128xf32, #tpu.memory_space<vmem>>, vector<8x128xf32>
    %7 = arith.subf %6, %0 : vector<8x128xf32>
    %8 = math.absf %7 : vector<8x128xf32>
    %cst_5 = arith.constant 2.621440e-01 : f32
    %9 = vector.broadcast %cst_5 : f32 to vector<8x128xf32>
    %10 = arith.mulf %9, %8 : vector<8x128xf32>
    %11 = arith.addf %5, %10 : vector<8x128xf32>
    %c0_6 = arith.constant 0 : index
    %c0_7 = arith.constant 0 : index
    %12 = vector.load %arg5[%c0_6, %c0_7] : memref<8x128xf32, #tpu.memory_space<vmem>>, vector<8x128xf32>
    %13 = arith.subf %12, %0 : vector<8x128xf32>
    %14 = math.absf %13 : vector<8x128xf32>
    %cst_8 = arith.constant 3.276800e-01 : f32
    %15 = vector.broadcast %cst_8 : f32 to vector<8x128xf32>
    %16 = arith.mulf %15, %14 : vector<8x128xf32>
    %17 = arith.addf %11, %16 : vector<8x128xf32>
    %c0_9 = arith.constant 0 : index
    %c0_10 = arith.constant 0 : index
    %18 = vector.load %arg6[%c0_9, %c0_10] : memref<8x128xf32, #tpu.memory_space<vmem>>, vector<8x128xf32>
    %19 = arith.subf %18, %0 : vector<8x128xf32>
    %20 = math.absf %19 : vector<8x128xf32>
    %cst_11 = arith.constant 4.096000e-01 : f32
    %21 = vector.broadcast %cst_11 : f32 to vector<8x128xf32>
    %22 = arith.mulf %21, %20 : vector<8x128xf32>
    %23 = arith.addf %17, %22 : vector<8x128xf32>
    %c0_12 = arith.constant 0 : index
    %c0_13 = arith.constant 0 : index
    %24 = vector.load %arg7[%c0_12, %c0_13] : memref<8x128xf32, #tpu.memory_space<vmem>>, vector<8x128xf32>
    %25 = arith.subf %24, %0 : vector<8x128xf32>
    %26 = math.absf %25 : vector<8x128xf32>
    %cst_14 = arith.constant 5.120000e-01 : f32
    %27 = vector.broadcast %cst_14 : f32 to vector<8x128xf32>
    %28 = arith.mulf %27, %26 : vector<8x128xf32>
    %29 = arith.addf %23, %28 : vector<8x128xf32>
    %c0_15 = arith.constant 0 : index
    %c0_16 = arith.constant 0 : index
    %30 = vector.load %arg8[%c0_15, %c0_16] : memref<8x128xf32, #tpu.memory_space<vmem>>, vector<8x128xf32>
    %31 = arith.subf %30, %0 : vector<8x128xf32>
    %32 = math.absf %31 : vector<8x128xf32>
    %cst_17 = arith.constant 6.400000e-01 : f32
    %33 = vector.broadcast %cst_17 : f32 to vector<8x128xf32>
    %34 = arith.mulf %33, %32 : vector<8x128xf32>
    %35 = arith.addf %29, %34 : vector<8x128xf32>
    %c0_18 = arith.constant 0 : index
    %c0_19 = arith.constant 0 : index
    %36 = vector.load %arg9[%c0_18, %c0_19] : memref<8x128xf32, #tpu.memory_space<vmem>>, vector<8x128xf32>
    %37 = arith.subf %36, %0 : vector<8x128xf32>
    %38 = math.absf %37 : vector<8x128xf32>
    %cst_20 = arith.constant 8.000000e-01 : f32
    %39 = vector.broadcast %cst_20 : f32 to vector<8x128xf32>
    %40 = arith.mulf %39, %38 : vector<8x128xf32>
    %41 = arith.addf %35, %40 : vector<8x128xf32>
    %c0_21 = arith.constant 0 : index
    %c0_22 = arith.constant 0 : index
    %42 = vector.load %arg10[%c0_21, %c0_22] : memref<8x128xf32, #tpu.memory_space<vmem>>, vector<8x128xf32>
    %43 = arith.subf %42, %0 : vector<8x128xf32>
    %44 = math.absf %43 : vector<8x128xf32>
    %cst_23 = arith.constant 1.000000e+00 : f32
    %45 = vector.broadcast %cst_23 : f32 to vector<8x128xf32>
    %46 = arith.mulf %45, %44 : vector<8x128xf32>
    %47 = arith.addf %41, %46 : vector<8x128xf32>
    %c0_24 = arith.constant 0 : index
    %c0_25 = arith.constant 0 : index
    %48 = vector.load %arg2[%c0_24, %c0_25] : memref<8x128xf32, #tpu.memory_space<vmem>>, vector<8x128xf32>
    %49 = arith.mulf %48, %47 : vector<8x128xf32>
    %50 = vector.shape_cast %49 : vector<8x128xf32> to vector<1x8x128xf32>
    %cst_26 = arith.constant dense<0.000000e+00> : vector<1xf32>
    %51 = vector.multi_reduction <add>, %50, %cst_26 [1, 2] : vector<1x8x128xf32> to vector<1xf32>
    %52 = vector.shape_cast %51 : vector<1xf32> to vector<1x1x1xf32>
    %53 = vector.extract %52[0, 0, 0] : f32 from vector<1x1x1xf32>
    %cst_27 = arith.constant 9.765625E-4 : f32
    %54 = arith.mulf %53, %cst_27 : f32
    %c0_28 = arith.constant 0 : index
    %c0_29 = arith.constant 0 : index
    %55 = memref.load %arg11[%c0_28, %c0_29] : memref<1x1xf32, #tpu.memory_space<smem>>
    memref.store %54, %arg11[%c0_28, %c0_29] : memref<1x1xf32, #tpu.memory_space<smem>>
    return
  }
  func.func @transform_0(%arg0: i32) -> (i32, i32) {
    %c0_i32 = arith.constant 0 : i32
    %c0_i32_0 = arith.constant 0 : i32
    return %arg0, %c0_i32 : i32, i32
  }
  func.func @transform_1(%arg0: i32) -> (i32, i32) {
    %c0_i32 = arith.constant 0 : i32
    %c0_i32_0 = arith.constant 0 : i32
    return %arg0, %c0_i32 : i32, i32
  }
  func.func @transform_2(%arg0: i32) -> (i32, i32) {
    %c0_i32 = arith.constant 0 : i32
    %c0_i32_0 = arith.constant 0 : i32
    return %arg0, %c0_i32 : i32, i32
  }
  func.func @transform_3(%arg0: i32) -> (i32, i32) {
    %c0_i32 = arith.constant 0 : i32
    %c0_i32_0 = arith.constant 0 : i32
    return %arg0, %c0_i32 : i32, i32
  }
  func.func @transform_4(%arg0: i32) -> (i32, i32) {
    %c0_i32 = arith.constant 0 : i32
    %c0_i32_0 = arith.constant 0 : i32
    return %arg0, %c0_i32 : i32, i32
  }
  func.func @transform_5(%arg0: i32) -> (i32, i32) {
    %c0_i32 = arith.constant 0 : i32
    %c0_i32_0 = arith.constant 0 : i32
    return %arg0, %c0_i32 : i32, i32
  }
  func.func @transform_6(%arg0: i32) -> (i32, i32) {
    %c0_i32 = arith.constant 0 : i32
    %c0_i32_0 = arith.constant 0 : i32
    return %arg0, %c0_i32 : i32, i32
  }
  func.func @transform_7(%arg0: i32) -> (i32, i32) {
    %c0_i32 = arith.constant 0 : i32
    %c0_i32_0 = arith.constant 0 : i32
    return %arg0, %c0_i32 : i32, i32
  }
  func.func @transform_8(%arg0: i32) -> (i32, i32) {
    %c0_i32 = arith.constant 0 : i32
    %c0_i32_0 = arith.constant 0 : i32
    return %arg0, %c0_i32 : i32, i32
  }
  func.func @transform_9(%arg0: i32) -> (i32, i32) {
    %c0_i32 = arith.constant 0 : i32
    %c0_i32_0 = arith.constant 0 : i32
    return %arg0, %c0_i32 : i32, i32
  }
  func.func @transform_10(%arg0: i32) -> (i32, i32) {
    %c0_i32 = arith.constant 0 : i32
    %c0_i32_0 = arith.constant 0 : i32
    return %arg0, %c0_i32 : i32, i32
  }
}

</mosaic_0001>

<bundles_post_ra>
// kernel: tpu_custom_call.1
= control target key start
LH: loop header
LB: loop body
LE: loop exit
PB: predicated region body
PF: predicated region fallthrough
CT: control target
= control target key end

     0   :  { %15 = vsyncpa [#allocation3], 0  ;;  %s495_s0 = inlined_call_operand.hbm [shape: f32[8,128], index: 0, kind: input, shape index: {}]   ;;  %s496_s1 = inlined_call_operand.hbm [shape: f32[8,128], index: 1, kind: input, shape index: {}]   ;;  %s497_s2 = inlined_call_operand.hbm [shape: f32[8,128], index: 2, kind: input, shape index: {}]   ;;  %s498_s3 = inlined_call_operand.vmem [shape: f32[8,128], index: 3, kind: input, shape index: {}]   ;;  %s499_s4 = inlined_call_operand.hbm [shape: f32[8,128], index: 4, kind: input, shape index: {}]   ;;  %s500_s5 = inlined_call_operand.vmem [shape: f32[8,128], index: 5, kind: input, shape index: {}]   ;;  %s501_s6 = inlined_call_operand.hbm [shape: f32[8,128], index: 6, kind: input, shape index: {}]   ;;  %s502_s7 = inlined_call_operand.vmem [shape: f32[8,128], index: 7, kind: input, shape index: {}]   ;;  %s503_s8 = inlined_call_operand.hbm [shape: f32[8,128], index: 8, kind: input, shape index: {}]   ;;  %s504_s9 = inlined_call_operand.vmem [shape: f32[8,128], index: 9, kind: input, shape index: {}]   ;;  %s505_s10 = inlined_call_operand.hbm [shape: f32[1,1], index: 10, kind: output, shape index: {}]  }
   0x1   :  { %16 = vsyncpa [#allocation6], 0 }
   0x2   :  { %17 = vsyncpa [#allocation9], 0 }
   0x3   :  { %18 = vsyncpa [#allocation12], 0 }
   0x4   :  { %19 = vsyncpa [#allocation4], 0  ;;  %s337_s13 = smov [#allocation5]   ;;  %s338_s15 = smov [#allocation8]  }
   0x5   :  { %s36_s14 = sshll.u32 %s337_s13, 4  ;;  %s58_s16 = sshll.u32 %s338_s15, 4  ;;  %s37_s14 = int_to_ptr.vmem [resolvable:$true] %s36_s14  ;;  %s59_s16 = int_to_ptr.vmem [resolvable:$true] %s58_s16 }
   0x6   :  { %s185_s19 = scalar_lea.hbm %s496_s1, 128 }
   0x7   :  { %p186_p0 = scmp.ne.s32.totalorder %s496_s1, %s185_s19  ;;  %p189_p1 = scmp.lt.u32.totalorder %s185_s19, %s496_s1 }
   0x9   :  { %p191_p2 = pnand %p189_p1, %p186_p0 }
   0xb   :  { %194 = shalt.err (!%p191_p2)
}
   0xc   :  { %s195_s24 = scalar_lea.vmem %s37_s14, 128  ;;  %p200_p4 = scmp.lt.s32.totalorder %s37_s14, %s37_s14 }
   0xd   :  { %p196_p3 = scmp.ne.s32.totalorder %s37_s14, %s195_s24  ;;  %p201_p5 = scmp.lt.s32.totalorder %s195_s24, %s195_s24 }
   0xf   :  { %p202_p6 = por %p201_p5, %p200_p4 }
  0x11   :  { %p203_p7 = pnand %p202_p6, %p196_p3 }
  0x13   :  { %206 = shalt.err (!%p203_p7)
}
  0x14   :  { %39 = dma.hbm_to_vmem [thread:$0]  %s496_s1, 128, %s37_s14, [#allocation6]  }
  0x15   :  { %s207_s29 = scalar_lea.hbm %s499_s4, 128 }
  0x16   :  { %p208_p8 = scmp.ne.s32.totalorder %s499_s4, %s207_s29  ;;  %p211_p9 = scmp.lt.u32.totalorder %s207_s29, %s499_s4 }
  0x18   :  { %p213_p10 = pnand %p211_p9, %p208_p8 }
  0x1a   :  { %216 = shalt.err (!%p213_p10)
}
  0x1b   :  { %s217_s15 = scalar_lea.vmem %s59_s16, 128  ;;  %p222_p12 = scmp.lt.s32.totalorder %s59_s16, %s59_s16 }
  0x1c   :  { %p218_p11 = scmp.ne.s32.totalorder %s59_s16, %s217_s15  ;;  %p223_p13 = scmp.lt.s32.totalorder %s217_s15, %s217_s15 }
  0x1e   :  { %p224_p0 = por %p223_p13, %p222_p12 }
  0x20   :  { %p225_p1 = pnand %p224_p0, %p218_p11 }
  0x22   :  { %228 = shalt.err (!%p225_p1)
}
  0x23   :  { %61 = dma.hbm_to_vmem [thread:$0]  %s499_s4, 128, %s59_s16, [#allocation9]  }
  0x24   :  { %s339_s17 = smov [#allocation2]   ;;  %s340_s19 = smov [#allocation7]  }
  0x25   :  { %s26_s18 = sshll.u32 %s339_s17, 4  ;;  %s46_s20 = sshll.u32 %s340_s19, 4  ;;  %s27_s18 = int_to_ptr.vmem [resolvable:$true] %s26_s18  ;;  %s47_s20 = int_to_ptr.vmem [resolvable:$true] %s46_s20 }
  0x26   :  { %s229_s23 = scalar_lea.hbm %s495_s0, 128 }
  0x27   :  { %p230_p2 = scmp.ne.s32.totalorder %s495_s0, %s229_s23  ;;  %p233_p3 = scmp.lt.u32.totalorder %s229_s23, %s495_s0 }
  0x29   :  { %p235_p4 = pnand %p233_p3, %p230_p2 }
  0x2b   :  { %238 = shalt.err (!%p235_p4)
}
  0x2c   :  { %s239_s4 = scalar_lea.vmem %s27_s18, 128  ;;  %p244_p6 = scmp.lt.s32.totalorder %s27_s18, %s27_s18 }
  0x2d   :  { %p240_p5 = scmp.ne.s32.totalorder %s27_s18, %s239_s4  ;;  %p245_p7 = scmp.lt.s32.totalorder %s239_s4, %s239_s4 }
  0x2f   :  { %p246_p8 = por %p245_p7, %p244_p6 }
  0x31   :  { %p247_p9 = pnand %p246_p8, %p240_p5 }
  0x33   :  { %250 = shalt.err (!%p247_p9)
}
  0x34   :  { %29 = dma.hbm_to_vmem [thread:$0]  %s495_s0, 128, %s27_s18, [#allocation3]  }
  0x35   :  { %s251_s11 = scalar_lea.hbm %s497_s2, 128 }
  0x36   :  { %p252_p10 = scmp.ne.s32.totalorder %s497_s2, %s251_s11  ;;  %p255_p11 = scmp.lt.u32.totalorder %s251_s11, %s497_s2 }
  0x38   :  { %p257_p12 = pnand %p255_p11, %p252_p10 }
  0x3a   :  { %260 = shalt.err (!%p257_p12)
}
  0x3b   :  { %s261_s14 = scalar_lea.vmem %s47_s20, 128  ;;  %p266_p0 = scmp.lt.s32.totalorder %s47_s20, %s47_s20 }
  0x3c   :  { %p262_p13 = scmp.ne.s32.totalorder %s47_s20, %s261_s14  ;;  %p267_p1 = scmp.lt.s32.totalorder %s261_s14, %s261_s14 }
  0x3e   :  { %p268_p2 = por %p267_p1, %p266_p0 }
  0x40   :  { %p269_p3 = pnand %p268_p2, %p262_p13 }
  0x42   :  { %272 = shalt.err (!%p269_p3)
}
  0x43   :  { %49 = dma.hbm_to_vmem [thread:$0]  %s497_s2, 128, %s47_s20, [#allocation6]  }
  0x44   :  { %s341_s18 = smov [#allocation10]   ;;  %s342_s21 = smov [#allocation11]  }
  0x45   :  { %s70_s19 = sshll.u32 %s341_s18, 4  ;;  %s82_s22 = sshll.u32 %s342_s21, 4  ;;  %s71_s19 = int_to_ptr.vmem [resolvable:$true] %s70_s19  ;;  %s83_s22 = int_to_ptr.vmem [resolvable:$true] %s82_s22 }
  0x46   :  { %s273_s25 = scalar_lea.hbm %s501_s6, 128 }
  0x47   :  { %p274_p4 = scmp.ne.s32.totalorder %s501_s6, %s273_s25  ;;  %p277_p5 = scmp.lt.u32.totalorder %s273_s25, %s501_s6 }
  0x49   :  { %p279_p6 = pnand %p277_p5, %p274_p4 }
  0x4b   :  { %282 = shalt.err (!%p279_p6)
}
  0x4c   :  { %s283_s2 = scalar_lea.vmem %s71_s19, 128  ;;  %p288_p8 = scmp.lt.s32.totalorder %s71_s19, %s71_s19 }
  0x4d   :  { %p284_p7 = scmp.ne.s32.totalorder %s71_s19, %s283_s2  ;;  %p289_p9 = scmp.lt.s32.totalorder %s283_s2, %s283_s2 }
  0x4f   :  { %p290_p10 = por %p289_p9, %p288_p8 }
  0x51   :  { %p291_p11 = pnand %p290_p10, %p284_p7 }
  0x53   :  { %294 = shalt.err (!%p291_p11)
}
  0x54   :  { %73 = dma.hbm_to_vmem [thread:$0]  %s501_s6, 128, %s71_s19, [#allocation9]  }
  0x55   :  { %s295_s11 = scalar_lea.hbm %s503_s8, 128 }
  0x56   :  { %p296_p12 = scmp.ne.s32.totalorder %s503_s8, %s295_s11  ;;  %p299_p13 = scmp.lt.u32.totalorder %s295_s11, %s503_s8 }
  0x58   :  { %p301_p0 = pnand %p299_p13, %p296_p12 }
  0x5a   :  { %304 = shalt.err (!%p301_p0)
}
  0x5b   :  { %s305_s14 = scalar_lea.vmem %s83_s22, 128  ;;  %p310_p2 = scmp.lt.s32.totalorder %s83_s22, %s83_s22 }
  0x5c   :  { %p306_p1 = scmp.ne.s32.totalorder %s83_s22, %s305_s14  ;;  %p311_p3 = scmp.lt.s32.totalorder %s305_s14, %s305_s14 }
  0x5e   :  { %p312_p4 = por %p311_p3, %p310_p2 }
  0x60   :  { %p313_p5 = pnand %p312_p4, %p306_p1 }
  0x62   :  { %316 = shalt.err (!%p313_p5)
}
  0x63   :  { %85 = dma.hbm_to_vmem [thread:$0]  %s503_s8, 128, %s83_s22, [#allocation12]  }
  0x64   :  { %327 = dma.done.wait [#allocation3], 128  }
  0x65   :  { %328 = vsyncadd [#allocation3], 4294967168 }
  0x66   :  { %329 = dma.done.wait [#allocation6], 256  }
  0x67   :  { %330 = vsyncadd [#allocation6], 4294967040 }
  0x68   :  { %331 = dma.done.wait [#allocation9], 256  }
  0x69   :  { %332 = vsyncadd [#allocation9], 4294967040 }
  0x6a   :  { %333 = dma.done.wait [#allocation12], 128  }
  0x6b   :  { %334 = vsyncadd [#allocation12], 4294967168  ;;  %v106_v0 = vld [vmem:[#allocation2] sm:$0xff]  ;;  %v107_v1 = vld [vmem:[#allocation7] sm:$0xff]  ;;  %s317_s25 = scalar_lea.hbm %s505_s10, 16 }
  0x6c   :  { %v111_v2 = vld [vmem:[%s498_s3] sm:$0xff]  ;;  %v108_v3 = vsub.f32 %v107_v1, %v106_v0  ;;  %v116_v5 = vld [vmem:[#allocation8] sm:$0xff]  ;;  %v136_v12 = vld [vmem:[#allocation11] sm:$0xff]  ;;  %p318_p6 = scmp.ne.s32.totalorder %s505_s10, %s317_s25  ;;  %p321_p7 = scmp.lt.u32.totalorder %s317_s25, %s505_s10 }
  0x6d   :  { %v112_v4 = vsub.f32 %v111_v2, %v106_v0  ;;  %v121_v6 = vld [vmem:[%s500_s5] sm:$0xff]  ;;  %v117_v8 = vsub.f32 %v116_v5, %v106_v0  ;;  %v137_v21 = vsub.f32 %v136_v12, %v106_v0  ;;  %v145_v38 = vld [vmem:[#allocation5] sm:$0xff] }
  0x6e   :  { %v126_v7 = vld [vmem:[#allocation10] sm:$0xff]  ;;  %v122_v9 = vsub.f32 %v121_v6, %v106_v0  ;;  %v109_v13 = vand.u32 2147483647, %v108_v3  ;;  %p323_p8 = pnand %p321_p7, %p318_p6 }
  0x6f   :  { %v127_v10 = vsub.f32 %v126_v7, %v106_v0  ;;  %v131_v11 = vld [vmem:[%s502_s7] sm:$0xff]  ;;  %v113_v14 = vand.u32 2147483647, %v112_v4  ;;  %v118_v16 = vand.u32 2147483647, %v117_v8 }
  0x70   :  { %v132_v15 = vsub.f32 %v131_v11, %v106_v0  ;;  %v123_v17 = vand.u32 2147483647, %v122_v9  ;;  %v110_v18 = vmul.f32 0.2097152, %v109_v13  ;;  %v141_v26 = vld [vmem:[%s504_s9] sm:$0xff] }
  0x71   :  { %v114_v19 = vmul.f32 0.262144, %v113_v14  ;;  %v128_v20 = vand.u32 2147483647, %v127_v10  ;;  %v119_v22 = vmul.f32 0.32768, %v118_v16  ;;  %v142_v32 = vsub.f32 %v141_v26, %v106_v0 }
  0x72   :  { %v124_v24 = vmul.f32 0.4096, %v123_v17  ;;  %v133_v25 = vand.u32 2147483647, %v132_v15  ;;  %v138_v29 = vand.u32 2147483647, %v137_v21 }
  0x73   :  { %v115_v23 = vadd.f32 %v114_v19, %v110_v18  ;;  %v129_v28 = vmul.f32 0.512, %v128_v20  ;;  %v143_v36 = vand.u32 2147483647, %v142_v32 }
  0x74   :  { %v134_v31 = vmul.f32 0.64, %v133_v25  ;;  %v139_v34 = vmul.f32 0.8, %v138_v29 }
  0x75   :  { %v120_v27 = vadd.f32 %v119_v22, %v115_v23 }
  0x77   :  { %v125_v30 = vadd.f32 %v124_v24, %v120_v27 }
  0x79   :  { %v130_v33 = vadd.f32 %v129_v28, %v125_v30 }
  0x7b   :  { %v135_v35 = vadd.f32 %v134_v31, %v130_v33 }
  0x7d   :  { %v140_v37 = vadd.f32 %v139_v34, %v135_v35 }
  0x7f   :  { %v144_v39 = vadd.f32 %v143_v36, %v140_v37 }
  0x81   :  { %v146_v40 = vmul.f32 %v145_v38, %v144_v39 }
  0x83   :  { %147 = vadd.xlane.f32.xlu0 %v146_v40 }
 0x110   :  { %v148_v41 = vpop.xlane.xlu0 %147 }
 0x111   :  { %v149_v42 = vrot.slane %v148_v41, 4 }
 0x113   :  { %v150_v43 = vadd.f32 %v149_v42, %v148_v41 }
 0x115   :  { %v151_v44 = vrot.slane %v150_v43, 2 }
 0x117   :  { %v152_v45 = vadd.f32 %v151_v44, %v150_v43 }
 0x119   :  { %v153_v46 = vrot.slane %v152_v45, 1 }
 0x11b   :  { %v154_v47 = vadd.f32 %v153_v46, %v152_v45 }
 0x11d   :  { %176 = vpush %v154_v47 }
 0x14e   :  { %s177_s7 = spop %176 }
 0x14f   :  { %s156_s9 = smul.f32 0.0009765625, %s177_s7 }
 0x151   :  { %158 = sst [smem:[#allocation13]] %s156_s9 }
 0x152   :  { %326 = shalt.err (!%p323_p8)
}
 0x153   :  { %s343_s2 = smov [#allocation13]  }
 0x154   :  { %166 = dma.smem_to_hbm %s343_s2, 16, %s505_s10, [#allocation4]  }
 0x155   :  { %335 = dma.done.wait [#allocation4], 16  }
 0x156   :  { %336 = vsyncadd [#allocation4], 4294967280 }
 0x157   :  { %170 = sfence }
 0x158   :  { %171 = vsyncpa [#allocation3], 1 }
 0x159   :  { %172 = vsyncpa [#allocation6], 1 }
 0x15a   :  { %173 = vsyncpa [#allocation9], 1 }
 0x15b   :  { %174 = vsyncpa [#allocation12], 1 }
 0x15c   :  { %175 = vsyncpa [#allocation4], 1 }

</bundles_post_ra>
